<compile_context>
chip_gen: v5e
topology: v5e:2x2
jax: 0.10.0
libtpu: 0.0.40
codegen_flags: <defaults>
</compile_context>

<pallas_src>
import functools
import math

import jax
import jax.numpy as jnp
from jax import lax
from jax.experimental import pallas as pl
from jax.experimental.pallas import tpu as pltpu

_INV_SQRT2 = 1.0 / math.sqrt(2.0)
_MATMUL_DTYPE = jnp.bfloat16     # MXU operand dtype (accumulation stays f32)
_ACT_DTYPE = jnp.bfloat16        # inter-kernel activation storage dtype

# ---- per-generation VMEM budget (>=16 MiB headroom for Mosaic scratch) ----
_VMEM_LIMIT = 48 * 1024 * 1024   # safe default (fits v7x's 64 MiB)
try:
    _cap = int(pltpu.get_tpu_info().vmem_capacity_bytes)
    _VMEM_LIMIT = min(max(_cap - 16 * 1024 * 1024, 32 * 1024 * 1024),
                      96 * 1024 * 1024)
except Exception:
    pass

# Bigger M tiles on 128-MiB VMEM chips (v5e/v6e) push the dense kernels past
# the HBM roofline crossover; keep 512 on 64-MiB v7x.
_TM_CAP = 1024 if _VMEM_LIMIT >= 80 * 1024 * 1024 else 512
_TN_CAP = 1024


# ----------------------------------------------------------------------------
# fused Linear (+ bias, + optional exact-erf GELU)
# ----------------------------------------------------------------------------
def _linear_kernel(x_ref, w_ref, b_ref, o_ref, *, activation):
    # K fully resident: one MXU pass per (tm, tn) tile, f32 accumulation.
    y = jnp.dot(x_ref[...], w_ref[...], preferred_element_type=jnp.float32)
    y = y + b_ref[...].astype(jnp.float32)
    if activation == "gelu":
        # exact erf GELU -- matches torch.nn.functional.gelu default
        y = 0.5 * y * (1.0 + lax.erf(y * _INV_SQRT2))
    o_ref[...] = y.astype(o_ref.dtype)


def fused_linear(x2, w_t, b, *, activation=None, tm_cap=None, tn_cap=None,
                 out_dtype=_ACT_DTYPE):
    """x2: [M, K] (bf16); w_t: [K, N] bf16 (transposed torch weight); b: [N] f32."""
    m_dim, k_dim = x2.shape
    k2, n_dim = w_t.shape
    assert k2 == k_dim
    tm = min(m_dim, tm_cap or _TM_CAP)
    tn = min(n_dim, tn_cap or _TN_CAP)
    gm, gn = pl.cdiv(m_dim, tm), pl.cdiv(n_dim, tn)
    b2 = b.reshape(1, n_dim).astype(jnp.float32)

    # Grid-order choice: with the N axis innermost the weight block is
    # re-streamed gm times; with M innermost the activation block is
    # re-streamed gn times.  Pick whichever re-streams fewer bytes.
    x_bytes = m_dim * k_dim * x2.dtype.itemsize
    w_bytes = k_dim * n_dim * w_t.dtype.itemsize
    if x_bytes * gn <= w_bytes * gm:
        grid = (gn, gm)                              # M innermost, W resident
        x_map = lambda j, i: (i, 0)
        w_map = lambda j, i: (0, j)
        b_map = lambda j, i: (0, j)
        o_map = lambda j, i: (i, j)
    else:
        grid = (gm, gn)                              # N innermost, X resident
        x_map = lambda i, j: (i, 0)
        w_map = lambda i, j: (0, j)
        b_map = lambda i, j: (0, j)
        o_map = lambda i, j: (i, j)

    return pl.pallas_call(
        functools.partial(_linear_kernel, activation=activation),
        out_shape=jax.ShapeDtypeStruct((m_dim, n_dim), out_dtype),
        grid_spec=pltpu.PrefetchScalarGridSpec(
            num_scalar_prefetch=0,
            grid=grid,
            in_specs=[pl.BlockSpec((tm, k_dim), x_map),
                      pl.BlockSpec((k_dim, tn), w_map),
                      pl.BlockSpec((1, tn), b_map)],
            out_specs=pl.BlockSpec((tm, tn), o_map),
        ),
        compiler_params=pltpu.CompilerParams(
            dimension_semantics=("parallel", "parallel"),
            vmem_limit_bytes=_VMEM_LIMIT,
        ),
    )(x2, w_t, b2)


# ----------------------------------------------------------------------------
# fused Linear + bias + residual add + LayerNorm (N = hidden size, untiled)
# ----------------------------------------------------------------------------
def _linear_add_ln_kernel(x_ref, w_ref, b_ref, r_ref, g_ref, bt_ref, o_ref, *, eps):
    y = jnp.dot(x_ref[...], w_ref[...], preferred_element_type=jnp.float32)
    y = y + b_ref[...].astype(jnp.float32) + r_ref[...].astype(jnp.float32)
    mean = jnp.mean(y, axis=-1, keepdims=True)
    yc = y - mean
    var = jnp.mean(yc * yc, axis=-1, keepdims=True)
    y = yc * lax.rsqrt(var + eps) * g_ref[...].astype(jnp.float32) \
        + bt_ref[...].astype(jnp.float32)
    o_ref[...] = y.astype(o_ref.dtype)


def fused_linear_add_ln(x2, w_t, b, residual, gamma, beta, *, eps,
                        tm_cap=None, out_dtype=_ACT_DTYPE):
    """LayerNorm(x2 @ w_t + b + residual).  x2: [M, K]; w_t: [K, H]; rest [*, H]."""
    m_dim, k_dim = x2.shape
    k2, n_dim = w_t.shape
    assert k2 == k_dim
    tm = min(m_dim, tm_cap or _TM_CAP)
    grid = (pl.cdiv(m_dim, tm),)
    b2 = b.reshape(1, n_dim).astype(jnp.float32)
    g2 = gamma.reshape(1, n_dim).astype(jnp.float32)
    bt2 = beta.reshape(1, n_dim).astype(jnp.float32)

    row_in = pl.BlockSpec((tm, k_dim), lambda i: (i, 0))
    row_res = pl.BlockSpec((tm, n_dim), lambda i: (i, 0))
    full_w = pl.BlockSpec((k_dim, n_dim), lambda i: (0, 0))
    vec = pl.BlockSpec((1, n_dim), lambda i: (0, 0))

    return pl.pallas_call(
        functools.partial(_linear_add_ln_kernel, eps=eps),
        out_shape=jax.ShapeDtypeStruct((m_dim, n_dim), out_dtype),
        grid_spec=pltpu.PrefetchScalarGridSpec(
            num_scalar_prefetch=0,
            grid=grid,
            in_specs=[row_in, full_w, vec, row_res, vec, vec],
            out_specs=row_res,
        ),
        compiler_params=pltpu.CompilerParams(
            dimension_semantics=("parallel",),
            vmem_limit_bytes=_VMEM_LIMIT,
        ),
    )(x2, w_t, b2, residual, g2, bt2)


# ----------------------------------------------------------------------------
# standalone LayerNorm (embeddings)
# ----------------------------------------------------------------------------
def _layernorm_kernel(x_ref, g_ref, b_ref, o_ref, *, eps):
    x = x_ref[...].astype(jnp.float32)
    mean = jnp.mean(x, axis=-1, keepdims=True)
    xc = x - mean
    var = jnp.mean(xc * xc, axis=-1, keepdims=True)
    o_ref[...] = (xc * lax.rsqrt(var + eps) * g_ref[...] + b_ref[...]).astype(o_ref.dtype)


def layernorm(x2, gamma, beta, *, eps, tm_cap=None, out_dtype=_ACT_DTYPE):
    m_dim, h = x2.shape
    tm = min(m_dim, tm_cap or _TM_CAP)
    g2 = gamma.reshape(1, h).astype(jnp.float32)
    b2 = beta.reshape(1, h).astype(jnp.float32)
    row = pl.BlockSpec((tm, h), lambda i: (i, 0))
    vec = pl.BlockSpec((1, h), lambda i: (0, 0))
    return pl.pallas_call(
        functools.partial(_layernorm_kernel, eps=eps),
        out_shape=jax.ShapeDtypeStruct((m_dim, h), out_dtype),
        grid_spec=pltpu.PrefetchScalarGridSpec(
            num_scalar_prefetch=0,
            grid=(pl.cdiv(m_dim, tm),),
            in_specs=[row, vec, vec],
            out_specs=row,
        ),
        compiler_params=pltpu.CompilerParams(
            dimension_semantics=("parallel",),
            vmem_limit_bytes=_VMEM_LIMIT,
        ),
    )(x2, g2, b2)


# ----------------------------------------------------------------------------
# multi-head self-attention on the packed [B, S, 3H] QKV tensor
# ----------------------------------------------------------------------------
def _mha_kernel(q_ref, k_ref, v_ref, m_ref, o_ref, *, heads, head_dim, sm_scale,
                q_off, k_off, v_off):
    mask = m_ref[...].astype(jnp.float32)                       # (1, S) additive
    outs = []
    for g in range(heads):                                      # static unroll
        lo = g * head_dim
        q = q_ref[:, q_off + lo: q_off + lo + head_dim]         # bf16 (S, Dh)
        k = k_ref[:, k_off + lo: k_off + lo + head_dim]         # bf16 (S, Dh)
        v = v_ref[:, v_off + lo: v_off + lo + head_dim]         # bf16 (S, Dh)
        # scores = Q @ K^T : bf16 operands, f32 accumulation
        s = lax.dot_general(q, k, (((1,), (1,)), ((), ())),
                            preferred_element_type=jnp.float32) * sm_scale
        s = s + mask
        s = s - jnp.max(s, axis=-1, keepdims=True)
        p = jnp.exp(s)
        inv = pl.reciprocal(jnp.sum(p, axis=-1, keepdims=True), approx=True)
        ctx = jnp.dot(p.astype(v.dtype), v, preferred_element_type=jnp.float32)
        outs.append(ctx * inv)
    o_ref[...] = jnp.concatenate(outs, axis=-1).astype(o_ref.dtype)


def mha_attention(qkv3, ext_mask, *, num_heads, head_dim, sm_scale):
    """qkv3: [B, S, 3H] packed Q|K|V (bf16); ext_mask: [B, 1, S] f32 additive."""
    b, s, three_h = qkv3.shape
    h = num_heads * head_dim
    assert three_h == 3 * h

    gd = None                                  # head-group width (lane-dense)
    for cand in (256, 128):
        if h % cand == 0 and cand % head_dim == 0:
            gd = cand
            break

    if gd is None:
        # Small-model fallback: all heads in one group; blocks carry the whole
        # packed 3H row (full-dim satisfies the lane constraint).
        heads_per_group, n_groups = num_heads, 1
        blk = (None, s, three_h)
        q_spec = pl.BlockSpec(blk, lambda bi, gi: (bi, 0, 0))
        k_spec = pl.BlockSpec(blk, lambda bi, gi: (bi, 0, 0))
        v_spec = pl.BlockSpec(blk, lambda bi, gi: (bi, 0, 0))
        q_off, k_off, v_off = 0, h, 2 * h
        out_spec = pl.BlockSpec((None, s, h), lambda bi, gi: (bi, 0, 0))
    else:
        heads_per_group = gd // head_dim
        n_groups = num_heads // heads_per_group
        blk = (None, s, gd)
        q_spec = pl.BlockSpec(blk, lambda bi, gi: (bi, 0, gi))
        k_spec = pl.BlockSpec(blk, lambda bi, gi: (bi, 0, n_groups + gi))
        v_spec = pl.BlockSpec(blk, lambda bi, gi: (bi, 0, 2 * n_groups + gi))
        q_off = k_off = v_off = 0
        out_spec = pl.BlockSpec(blk, lambda bi, gi: (bi, 0, gi))

    mask_spec = pl.BlockSpec((None, 1, s), lambda bi, gi: (bi, 0, 0))

    return pl.pallas_call(
        functools.partial(_mha_kernel, heads=heads_per_group, head_dim=head_dim,
                          sm_scale=sm_scale, q_off=q_off, k_off=k_off, v_off=v_off),
        out_shape=jax.ShapeDtypeStruct((b, s, h), qkv3.dtype),
        grid_spec=pltpu.PrefetchScalarGridSpec(
            num_scalar_prefetch=0,
            grid=(b, n_groups),
            in_specs=[q_spec, k_spec, v_spec, mask_spec],
            out_specs=out_spec,
        ),
        compiler_params=pltpu.CompilerParams(
            dimension_semantics=("parallel", "parallel"),
            vmem_limit_bytes=_VMEM_LIMIT,
        ),
    )(qkv3, qkv3, qkv3, ext_mask)


# ----------------------------------------------------------------------------
# BERT model: config, params, one-time TPU packing, forward
# ----------------------------------------------------------------------------
class BertConfig:
    def __init__(self, vocab_size=64, hidden_size=32, num_hidden_layers=2,
                 num_attention_heads=4, intermediate_size=128,
                 max_position_embeddings=16, type_vocab_size=2,
                 pad_token_id=0, layer_norm_eps=1e-12):
        self.vocab_size = vocab_size
        self.hidden_size = hidden_size
        self.num_hidden_layers = num_hidden_layers
        self.num_attention_heads = num_attention_heads
        self.intermediate_size = intermediate_size
        self.max_position_embeddings = max_position_embeddings
        self.type_vocab_size = type_vocab_size
        self.pad_token_id = pad_token_id
        self.layer_norm_eps = layer_norm_eps


def init_bert_params(key, cfg):
    """f32 'master' parameters, layout matching the torch module."""
    h, inter = cfg.hidden_size, cfg.intermediate_size

    def dense(k, fan_in, fan_out):
        kw, kb = jax.random.split(k)
        # weight stored transposed [in, out] so kernels compute x @ W_t + b
        return {"w_t": jax.random.normal(kw, (fan_in, fan_out), jnp.float32) * 0.02,
                "b": jax.random.normal(kb, (fan_out,), jnp.float32) * 0.02}

    def ln():
        return {"gamma": jnp.ones((h,), jnp.float32),
                "beta": jnp.zeros((h,), jnp.float32)}

    keys = jax.random.split(key, 4 + cfg.num_hidden_layers)
    word_emb = jax.random.normal(keys[0], (cfg.vocab_size, h), jnp.float32) * 0.02
    word_emb = word_emb.at[cfg.pad_token_id].set(0.0)          # padding_idx row
    pos_emb = jax.random.normal(keys[1], (cfg.max_position_embeddings, h),
                                jnp.float32) * 0.02
    tok_emb = jax.random.normal(keys[2], (cfg.type_vocab_size, h), jnp.float32) * 0.02

    layers = []
    for li in range(cfg.num_hidden_layers):
        lk = jax.random.split(keys[4 + li], 6)
        layers.append({
            "q": dense(lk[0], h, h), "k": dense(lk[1], h, h), "v": dense(lk[2], h, h),
            "attn_out": dense(lk[3], h, h), "attn_ln": ln(),
            "inter": dense(lk[4], h, inter), "out": dense(lk[5], inter, h),
            "out_ln": ln(),
        })
    return {"word_emb": word_emb, "pos_emb": pos_emb, "tok_emb": tok_emb,
            "emb_ln": ln(), "layers": layers}


def pack_params_for_tpu(params):
    """ONE-TIME conversion: bf16 weights + fused QKV weight; biases / LN stay f32."""
    def w(p):
        return p["w_t"].astype(_MATMUL_DTYPE)

    layers = []
    for lp in params["layers"]:
        layers.append({
            "qkv_w": jnp.concatenate([w(lp["q"]), w(lp["k"]), w(lp["v"])], axis=1),
            "qkv_b": jnp.concatenate([lp["q"]["b"], lp["k"]["b"], lp["v"]["b"]]),
            "attn_out_w": w(lp["attn_out"]), "attn_out_b": lp["attn_out"]["b"],
            "attn_ln": lp["attn_ln"],
            "inter_w": w(lp["inter"]), "inter_b": lp["inter"]["b"],
            "out_w": w(lp["out"]), "out_b": lp["out"]["b"],
            "out_ln": lp["out_ln"],
        })
    return {"word_emb": params["word_emb"], "pos_emb": params["pos_emb"],
            "tok_emb": params["tok_emb"], "emb_ln": params["emb_ln"],
            "layers": layers}


def bert_forward(tpu_params, cfg, input_ids, attention_mask=None, token_type_ids=None):
    b, s = input_ids.shape
    h = cfg.hidden_size
    nh = cfg.num_attention_heads
    dh = h // nh

    if attention_mask is None:
        attention_mask = jnp.ones_like(input_ids)
    if token_type_ids is None:
        token_type_ids = jnp.zeros_like(input_ids)
    # (1 - mask) * -10000 additive bias, broadcast over heads / query positions.
    ext_mask = ((1.0 - attention_mask.astype(jnp.float32)) * -10000.0).reshape(b, 1, s)

    # ---- embeddings ----
    # TODO(synk): embedding gathers are data-dependent lookups; done in plain JAX.
    position_ids = jnp.arange(s, dtype=jnp.int32)
    emb = (jnp.take(tpu_params["word_emb"], input_ids, axis=0)
           + jnp.take(tpu_params["pos_emb"], position_ids, axis=0)[None, :, :]
           + jnp.take(tpu_params["tok_emb"], token_type_ids, axis=0))
    x2 = layernorm(emb.reshape(b * s, h), tpu_params["emb_ln"]["gamma"],
                   tpu_params["emb_ln"]["beta"], eps=cfg.layer_norm_eps)
    # TODO(synk): dropout layers treated as identity (inference / eval mode).

    sm_scale = 1.0 / math.sqrt(dh)
    for lp in tpu_params["layers"]:
        # ---- self attention: fused QKV projection -> packed attention ----
        qkv = fused_linear(x2, lp["qkv_w"], lp["qkv_b"])            # [M, 3H] bf16
        ctx3 = mha_attention(qkv.reshape(b, s, 3 * h), ext_mask,
                             num_heads=nh, head_dim=dh, sm_scale=sm_scale)
        ctx2 = ctx3.reshape(b * s, h)                               # free reshape
        # output projection + residual + LayerNorm fused in one kernel
        attn_out = fused_linear_add_ln(ctx2, lp["attn_out_w"], lp["attn_out_b"],
                                       x2, lp["attn_ln"]["gamma"],
                                       lp["attn_ln"]["beta"], eps=cfg.layer_norm_eps)
        # ---- feed forward ----
        inter = fused_linear(attn_out, lp["inter_w"], lp["inter_b"],
                             activation="gelu")
        x2 = fused_linear_add_ln(inter, lp["out_w"], lp["out_b"],
                                 attn_out, lp["out_ln"]["gamma"],
                                 lp["out_ln"]["beta"], eps=cfg.layer_norm_eps)

    return x2.reshape(b, s, h).astype(jnp.float32)


# ----------------------------------------------------------------------------
# pure-JAX reference: torch BertModel math with the SAME precision policy
# (bf16 MXU operands / bf16 activation storage points, f32 everywhere else)
# ----------------------------------------------------------------------------
def bert_reference(params, cfg, input_ids, attention_mask=None, token_type_ids=None):
    b, s = input_ids.shape
    h = cfg.hidden_size
    nh = cfg.num_attention_heads
    dh = h // nh
    if attention_mask is None:
        attention_mask = jnp.ones_like(input_ids)
    if token_type_ids is None:
        token_type_ids = jnp.zeros_like(input_ids)
    ext = ((1.0 - attention_mask.astype(jnp.float32)) * -10000.0)[:, None, None, :]

    bf = lambda t: t.astype(_MATMUL_DTYPE)
    store = lambda t: t.astype(_ACT_DTYPE).astype(jnp.float32)   # bf16 storage points

    def dense(x, p, act=None):
        y = jnp.dot(bf(x), bf(p["w_t"]), preferred_element_type=jnp.float32) + p["b"]
        if act == "gelu":
            y = 0.5 * y * (1.0 + lax.erf(y * _INV_SQRT2))
        return y

    def ln(x, p, eps):
        mu = jnp.mean(x, -1, keepdims=True)
        var = jnp.mean((x - mu) ** 2, -1, keepdims=True)
        return (x - mu) * lax.rsqrt(var + eps) * p["gamma"] + p["beta"]

    pos = jnp.arange(s, dtype=jnp.int32)
    emb = (jnp.take(params["word_emb"], input_ids, axis=0)
           + jnp.take(params["pos_emb"], pos, axis=0)[None]
           + jnp.take(params["tok_emb"], token_type_ids, axis=0))
    x = store(ln(emb, params["emb_ln"], cfg.layer_norm_eps))
    for lp in params["layers"]:
        x2 = x.reshape(b * s, h)
        q = store(dense(x2, lp["q"])).reshape(b, s, nh, dh).transpose(0, 2, 1, 3)
        k = store(dense(x2, lp["k"])).reshape(b, s, nh, dh).transpose(0, 2, 1, 3)
        v = store(dense(x2, lp["v"])).reshape(b, s, nh, dh).transpose(0, 2, 1, 3)
        scores = jnp.einsum("bhqd,bhkd->bhqk", bf(q), bf(k),
                            preferred_element_type=jnp.float32) / math.sqrt(dh) + ext
        probs = jax.nn.softmax(scores, axis=-1)
        ctx = jnp.einsum("bhqk,bhkd->bhqd", bf(probs), bf(v),
                         preferred_element_type=jnp.float32)
        ctx = store(ctx).transpose(0, 2, 1, 3).reshape(b * s, h)
        attn = store(ln(dense(ctx, lp["attn_out"]) + x2, lp["attn_ln"],
                        cfg.layer_norm_eps))
        inter = store(dense(attn, lp["inter"], act="gelu"))
        x = store(ln(dense(inter, lp["out"]) + attn, lp["out_ln"],
                     cfg.layer_norm_eps)).reshape(b, s, h)
    return x


# ----------------------------------------------------------------------------
if __name__ == "__main__":
    cfg = BertConfig(vocab_size=64, hidden_size=32, num_hidden_layers=2,
                     num_attention_heads=4, intermediate_size=128,
                     max_position_embeddings=16, type_vocab_size=2)

    key = jax.random.PRNGKey(0)
    k_params, k_ids = jax.random.split(key)
    params = init_bert_params(k_params, cfg)          # f32 master params
    tpu_params = pack_params_for_tpu(params)          # one-time bf16 conversion

    batch, seq = 2, 8
    input_ids = jax.random.randint(k_ids, (batch, seq), 1, cfg.vocab_size,
                                   dtype=jnp.int32)
    # mask out the last two tokens of the second sequence to exercise the mask path
    attention_mask = jnp.ones((batch, seq), dtype=jnp.int32).at[1, -2:].set(0)
    token_type_ids = jnp.zeros((batch, seq), dtype=jnp.int32)

    out = bert_forward(tpu_params, cfg, input_ids, attention_mask, token_type_ids)
    out = jax.block_until_ready(out)

    ref = bert_reference(params, cfg, input_ids, attention_mask, token_type_ids)
    ref = jax.block_until_ready(ref)

    assert out.shape == (batch, seq, cfg.hidden_size)
    assert bool(jnp.allclose(out, ref, atol=2e-2, rtol=2e-2)), "mismatch vs reference"

    print("KERNEL_OK")
</pallas_src>

<mosaic_0001>
module attributes {stable_mosaic.version = 11 : i64} {
  func.func @_layernorm_kernel(%arg0: i32, %arg1: memref<16x32xf32, #tpu.memory_space<vmem>>, %arg2: memref<1x32xf32, #tpu.memory_space<vmem>>, %arg3: memref<1x32xf32, #tpu.memory_space<vmem>>, %arg4: memref<16x32xbf16, #tpu.memory_space<vmem>>) attributes {dimension_semantics = [#tpu.dimension_semantics<parallel>], iteration_bounds = array<i64: 1>, scalar_prefetch = 0 : i64, scratch_operands = 0 : i64, tpu.core_type = #tpu.core_type<tc>, window_params = [{transform_indices = @transform_0, window_bounds = array<i64: 16, 32>}, {pipeline_mode = #tpu.pipeline_mode<synchronous>, transform_indices = @transform_1, window_bounds = array<i64: 1, 32>}, {pipeline_mode = #tpu.pipeline_mode<synchronous>, transform_indices = @transform_2, window_bounds = array<i64: 1, 32>}, {transform_indices = @transform_3, window_bounds = array<i64: 16, 32>}]} {
    %c0 = arith.constant 0 : index
    %c0_0 = arith.constant 0 : index
    %0 = vector.load %arg1[%c0, %c0_0] : memref<16x32xf32, #tpu.memory_space<vmem>>, vector<16x32xf32>
    %cst = arith.constant dense<0.000000e+00> : vector<16xf32>
    %1 = vector.multi_reduction <add>, %0, %cst [1] : vector<16x32xf32> to vector<16xf32>
    %2 = vector.shape_cast %1 : vector<16xf32> to vector<16x1xf32>
    %cst_1 = arith.constant 3.200000e+01 : f32
    %3 = vector.broadcast %cst_1 : f32 to vector<16x1xf32>
    %4 = arith.divf %2, %3 : vector<16x1xf32>
    %5 = vector.broadcast %4 : vector<16x1xf32> to vector<16x32xf32>
    %6 = arith.subf %0, %5 : vector<16x32xf32>
    %7 = arith.mulf %6, %6 : vector<16x32xf32>
    %cst_2 = arith.constant dense<0.000000e+00> : vector<16xf32>
    %8 = vector.multi_reduction <add>, %7, %cst_2 [1] : vector<16x32xf32> to vector<16xf32>
    %9 = vector.shape_cast %8 : vector<16xf32> to vector<16x1xf32>
    %cst_3 = arith.constant 3.200000e+01 : f32
    %10 = vector.broadcast %cst_3 : f32 to vector<16x1xf32>
    %11 = arith.divf %9, %10 : vector<16x1xf32>
    %cst_4 = arith.constant 9.99999996E-13 : f32
    %12 = vector.broadcast %cst_4 : f32 to vector<16x1xf32>
    %13 = arith.addf %11, %12 : vector<16x1xf32>
    %14 = math.rsqrt %13 : vector<16x1xf32>
    %15 = vector.broadcast %14 : vector<16x1xf32> to vector<16x32xf32>
    %16 = arith.mulf %6, %15 : vector<16x32xf32>
    %c0_5 = arith.constant 0 : index
    %c0_6 = arith.constant 0 : index
    %17 = vector.load %arg2[%c0_5, %c0_6] : memref<1x32xf32, #tpu.memory_space<vmem>>, vector<1x32xf32>
    %18 = vector.broadcast %17 : vector<1x32xf32> to vector<16x32xf32>
    %19 = arith.mulf %16, %18 : vector<16x32xf32>
    %c0_7 = arith.constant 0 : index
    %c0_8 = arith.constant 0 : index
    %20 = vector.load %arg3[%c0_7, %c0_8] : memref<1x32xf32, #tpu.memory_space<vmem>>, vector<1x32xf32>
    %21 = vector.broadcast %20 : vector<1x32xf32> to vector<16x32xf32>
    %22 = arith.addf %19, %21 : vector<16x32xf32>
    %23 = arith.truncf %22 : vector<16x32xf32> to vector<16x32xbf16>
    %c0_9 = arith.constant 0 : index
    %c0_10 = arith.constant 0 : index
    %24 = vector.load %arg4[%c0_9, %c0_10] : memref<16x32xbf16, #tpu.memory_space<vmem>>, vector<16x32xbf16>
    tpu.vector_store %arg4[%c0_9, %c0_10], %23 {strides = array<i32>} : memref<16x32xbf16, #tpu.memory_space<vmem>>, vector<16x32xbf16>,
    return
  }
  func.func @transform_0(%arg0: i32) -> (i32, i32) {
    %c0_i32 = arith.constant 0 : i32
    %c0_i32_0 = arith.constant 0 : i32
    return %arg0, %c0_i32 : i32, i32
  }
  func.func @transform_1(%arg0: i32) -> (i32, i32) {
    %c0_i32 = arith.constant 0 : i32
    %c0_i32_0 = arith.constant 0 : i32
    %c0_i32_1 = arith.constant 0 : i32
    return %c0_i32, %c0_i32_0 : i32, i32
  }
  func.func @transform_2(%arg0: i32) -> (i32, i32) {
    %c0_i32 = arith.constant 0 : i32
    %c0_i32_0 = arith.constant 0 : i32
    %c0_i32_1 = arith.constant 0 : i32
    return %c0_i32, %c0_i32_0 : i32, i32
  }
  func.func @transform_3(%arg0: i32) -> (i32, i32) {
    %c0_i32 = arith.constant 0 : i32
    %c0_i32_0 = arith.constant 0 : i32
    return %arg0, %c0_i32 : i32, i32
  }
}

</mosaic_0001>

<bundles_post_ra>
// kernel: tpu_custom_call.1
= control target key start
LH: loop header
LB: loop body
LE: loop exit
PB: predicated region body
PF: predicated region fallthrough
CT: control target
= control target key end

     0   :  { %8 = vsyncpa [#allocation3], 0  ;;  %s274_s0 = inlined_call_operand.hbm [shape: f32[16,32], index: 0, kind: input, shape index: {}]   ;;  %s275_s1 = inlined_call_operand.hbm [shape: f32[1,32], index: 1, kind: input, shape index: {}]   ;;  %s276_s2 = inlined_call_operand.vmem [shape: f32[1,32], index: 2, kind: input, shape index: {}]   ;;  %s277_s3 = inlined_call_operand.hbm [shape: bf16[16,32], index: 3, kind: output, shape index: {}]  }
   0x1   :  { %9 = vsyncpa [#allocation6], 0 }
   0x2   :  { %10 = vsyncpa [#allocation4], 0  ;;  %s15_s14 = sshll.u32 %s274_s0, 4  ;;  %s230_s15 = smov [#allocation2]   ;;  %s16_s14 = int_to_ptr.hbm [resolvable:$true] %s15_s14 }
   0x3   :  { %s17_s16 = sshll.u32 %s230_s15, 4  ;;  %s29_s19 = sshll.u32 %s275_s1, 4  ;;  %s18_s16 = int_to_ptr.vmem [resolvable:$true] %s17_s16  ;;  %s30_s19 = int_to_ptr.hbm [resolvable:$true] %s29_s19 }
   0x4   :  { %s231_s20 = smov 128   ;;  %s232_s21 = smov 8  }
   0x5   :  { %23 = dma.hbm_to_vmem [thread:$0]  %s16_s14, 256, %s18_s16, [#allocation3], %s231_s20, %s231_s20, %s232_s21  }
   0x6   :  { %s233_s22 = smov [#allocation5]  }
   0x7   :  { %s31_s23 = sshll.u32 %s233_s22, 4  ;;  %s32_s23 = int_to_ptr.vmem [resolvable:$true] %s31_s23 }
   0x8   :  { %34 = dma.hbm_to_vmem [thread:$0]  %s30_s19, 16, %s32_s23, [#allocation6]  }
   0x9   :  { %224 = dma.done.wait [#allocation3], 256  }
   0xa   :  { %225 = vsyncadd [#allocation3], 4294967040 }
   0xb   :  { %226 = dma.done.wait [#allocation6], 16  }
   0xc   :  { %227 = vsyncadd [#allocation6], 4294967280  ;;  %vm47_vm0 = vcmask 261120   ;;  %v45_v0 = vld [vmem:[#allocation2] sm:$0xff]  ;;  %v46_v2 = vld [vmem:[#allocation2 + $0x8] sm:$0xff]  ;;  %v234_v4 = vmov 32.0  }
   0xd   :  { %v48_v1 = vsel %vm47_vm0, %v45_v0, 0.0  ;;  %v51_v3 = vsel %vm47_vm0, %v46_v2, 0.0  ;;  %146 = vrcp.f32 %v234_v4  ;;  %v144_v35 = vld [vmem:[#allocation5] ss:$0 sm:$0xff]  ;;  %v145_v38 = vld [vmem:[%s276_s2] ss:$0 sm:$0xff] }
   0xe   :  { %49 = vadd.xlane.f32.xlu0 %v48_v1  ;;  %vm113_vm7 = vcmask 257024   ;;  %s235_s24 = smov [#allocation7]   ;;  %s122_s2 = sshll.u32 %s277_s3, 4  ;;  %s123_s2 = int_to_ptr.hbm [resolvable:$true] %s122_s2 }
   0xf   :  { %s120_s25 = sshll.u32 %s235_s24, 4  ;;  %s236_s28 = smov 64   ;;  %s121_s25 = int_to_ptr.vmem [resolvable:$true] %s120_s25 }
  0x10   :  { %s237_s29 = smov 4  }
  0x13   :  { %v147_v5 = vpop.eup %146 }
  0x14   :  { %v55_v6 = vmul.f32 32.0, %v147_v5  ;;  %vm59_vm1 = vweird.f32 %v147_v5 }
  0x16   :  { %52 = vadd.xlane.f32.xlu0 %v51_v3  ;;  %v56_v7 = vsub.f32 1.0, %v55_v6 }
  0x18   :  { %v57_v8 = vmul.f32 %v147_v5, %v56_v7 }
  0x1a   :  { %v58_v9 = vadd.f32 %v147_v5, %v57_v8 }
  0x1c   :  { %v60_v10 = vsel %vm59_vm1, %v147_v5, %v58_v9 }
  0x81   :  { %v50_v11 = vpop.xlane.xlu0 %49 }
  0x82   :  { %v61_v12 = vmul.f32 %v60_v10, %v50_v11 }
  0x84   :  { %v63_v13 = vsub.f32 %v45_v0, %v61_v12 }
  0x86   :  { %v65_v14 = vmul.f32 %v63_v13, %v63_v13 }
  0x88   :  { %v67_v15 = vsel %vm47_vm0, %v65_v14, 0.0 }
  0x89   :  { %68 = vadd.xlane.f32.xlu1 %v67_v15  ;;  %v53_v16 = vpop.xlane.xlu0 %52 }
  0x8a   :  { %v62_v17 = vmul.f32 %v60_v10, %v53_v16 }
  0x8c   :  { %v64_v18 = vsub.f32 %v46_v2, %v62_v17 }
  0x8e   :  { %v66_v19 = vmul.f32 %v64_v18, %v64_v18 }
  0x90   :  { %v70_v20 = vsel %vm47_vm0, %v66_v19, 0.0 }
  0x91   :  { %71 = vadd.xlane.f32.xlu1 %v70_v20 }
  0xfc   :  { %v69_v21 = vpop.xlane.xlu1 %68 }
  0xfd   :  { %v73_v22 = vmul.f32 %v69_v21, %v60_v10 }
  0xff   :  { %v75_v23 = vadd.f32 1e-12, %v73_v22 }
 0x101   :  { %148 = vrsqrt.f32 %v75_v23  ;;  %vm83_vm3 = vweird.f32 %v75_v23 }
 0x104   :  { %v72_v24 = vpop.xlane.xlu1 %71 }
 0x105   :  { %v74_v25 = vmul.f32 %v72_v24, %v60_v10 }
 0x107   :  { %v149_v26 = vpop.eup %148  ;;  %v76_v27 = vadd.f32 1e-12, %v74_v25 }
 0x108   :  { %v78_v28 = vmul.f32 %v149_v26, %v75_v23  ;;  %vm84_vm2 = vweird.f32 %v149_v26 }
 0x109   :  { %150 = vrsqrt.f32 %v76_v27  ;;  %vm85_vm4 = vmor %vm83_vm3, %vm84_vm2  ;;  %vm93_vm6 = vweird.f32 %v76_v27 }
 0x10a   :  { %v79_v29 = vmul.f32 %v149_v26, %v78_v28 }
 0x10c   :  { %v80_v30 = vmul.f32 0.5, %v79_v29 }
 0x10e   :  { %v81_v31 = vsub.f32 1.5, %v80_v30 }
 0x10f   :  { %v151_v32 = vpop.eup %150 }
 0x110   :  { %v82_v33 = vmul.f32 %v149_v26, %v81_v31  ;;  %v88_v34 = vmul.f32 %v151_v32, %v76_v27  ;;  %vm94_vm5 = vweird.f32 %v151_v32 }
 0x111   :  { %vm95_vm8 = vmor %vm93_vm6, %vm94_vm5 }
 0x112   :  { %v86_v36 = vsel %vm85_vm4, %v149_v26, %v82_v33  ;;  %v89_v37 = vmul.f32 %v151_v32, %v88_v34 }
 0x113   :  { %v97_v39 = vmul.f32 %v86_v36, %v63_v13 }
 0x114   :  { %v90_v40 = vmul.f32 0.5, %v89_v37 }
 0x115   :  { %v103_v41 = vmul.f32 %v144_v35, %v97_v39 }
 0x116   :  { %v91_v42 = vsub.f32 1.5, %v90_v40 }
 0x117   :  { %v109_v43 = vadd.f32 %v145_v38, %v103_v41 }
 0x118   :  { %v92_v44 = vmul.f32 %v151_v32, %v91_v42 }
 0x119   :  { %v111_v45 = vpack.c.bf16 %v109_v43, %v109_v43 }
 0x11a   :  { %v96_v46 = vsel %vm95_vm8, %v151_v32, %v92_v44 }
 0x11b   :  { %v98_v47 = vmul.f32 %v96_v46, %v64_v18  ;;  %114 = vst.msk [vmem:[#allocation7] sm:$0xf] %vm113_vm7, %v111_v45 }
 0x11d   :  { %v104_v48 = vmul.f32 %v144_v35, %v98_v47 }
 0x11f   :  { %v110_v49 = vadd.f32 %v145_v38, %v104_v48 }
 0x121   :  { %v112_v50 = vpack.c.bf16 %v110_v49, %v110_v49 }
 0x123   :  { %115 = vst.msk [vmem:[#allocation7 + $0x4] sm:$0xf] %vm113_vm7, %v112_v50 }
 0x124   :  { %128 = dma.vmem_to_hbm [thread:$0]  %s121_s25, 128, %s123_s2, [#allocation4], %s236_s28, %s236_s28, %s237_s29  }
 0x125   :  { %228 = dma.done.wait [#allocation4], 128  }
 0x126   :  { %229 = vsyncadd [#allocation4], 4294967168 }
 0x127   :  { %133 = vsyncpa [#allocation3], 1 }
 0x128   :  { %134 = vsyncpa [#allocation6], 1 }
 0x129   :  { %135 = vsyncpa [#allocation4], 1 }

</bundles_post_ra>
